<compile_context>
chip_gen: v7x
topology: tpu7x:2x2x1
jax: 0.10.0
libtpu: 0.0.40
codegen_flags: <defaults>
</compile_context>

<pallas_src>
import jax
import jax.numpy as jnp
from jax.experimental import pallas as pl
from jax.experimental.pallas import tpu as pltpu


def _copy_rows_kernel(in_ref, out_ref):
    # Pure lane-dense 2D copy of one (TK, P*E) VMEM tile.
    out_ref[...] = in_ref[...]


def _choose_row_block(num_rows: int, row_bytes: int,
                      per_block_budget: int = 2 << 20) -> int:
    """Rows per block: whole array if it fits, else sublane-aligned (x8) chunk.

    per_block_budget is sized so that (in + out) x double-buffering stays well
    under the smallest scoped-VMEM default (16 MiB on v5e) and v7x's 64 MiB
    physical VMEM.
    """
    if num_rows * row_bytes <= per_block_budget:
        # Full-K block: exempt from the (8,...) divisibility rule.
        return num_rows
    rows = max(8, (per_block_budget // max(row_bytes, 1)) // 8 * 8)
    return min(rows, num_rows)


def build_prompt_embeddings(init_emb: jax.Array) -> jax.Array:
    """Materialize `init_emb.contiguous().view(K, P*E)` via a tiled Pallas copy.

    The flatten is a metadata-only reshape done before the kernel, so the
    pallas_call is a memcpy-style, HBM-bandwidth-bound tiled copy with
    lane-dense (last dim = P*E) loads and stores.
    """
    K, P, E = init_emb.shape
    D = P * E
    # Row-major flatten outside the kernel: zero data movement, identical
    # element order to torch's contiguous().view(K, P*E).
    flat = jnp.reshape(init_emb, (K, D))

    row_bytes = D * jnp.dtype(flat.dtype).itemsize
    tk = _choose_row_block(K, row_bytes)
    grid = (pl.cdiv(K, tk),)

    return pl.pallas_call(
        _copy_rows_kernel,
        out_shape=jax.ShapeDtypeStruct((K, D), flat.dtype),
        grid=grid,
        in_specs=[pl.BlockSpec((tk, D), lambda i: (i, 0))],
        out_specs=pl.BlockSpec((tk, D), lambda i: (i, 0)),
        compiler_params=pltpu.CompilerParams(
            # Independent row blocks -> shard across both TCs on v7x.
            dimension_semantics=("parallel",),
        ),
    )(flat)


class ContinuousPromptPool:
    """JAX/Pallas port of the PyTorch ContinuousPromptPool."""

    def __init__(self, config_dict, init_emb):
        self.K = config_dict["K"]
        self.prompt_length = config_dict["prompt_len"]
        self.embed_size = config_dict["embed_size"]

        assert init_emb.shape == (self.K, self.prompt_length, self.embed_size)

        # Parameter: (K, prompt_len * embed_size), materialized on-TPU via Pallas.
        self.prompt_embeddings = build_prompt_embeddings(init_emb)

        # Parameter: (K, embed_size) ~ randn. Deterministic synthetic init;
        # intentionally diverges from torch.randn's RNG stream.
        self.keys = jax.random.normal(
            jax.random.PRNGKey(1), (self.K, self.embed_size), dtype=jnp.float32
        )

    def forward(self):
        # TODO(synk): reference forward() is `pass` (returns None); no hot path to port.
        return None


if __name__ == "__main__":
    config = {"K": 4, "prompt_len": 8, "embed_size": 32}

    key = jax.random.PRNGKey(0)
    init_emb = jax.random.normal(
        key,
        (config["K"], config["prompt_len"], config["embed_size"]),
        dtype=jnp.float32,
    )

    pool = ContinuousPromptPool(config, init_emb)

    prompt_emb = jax.block_until_ready(pool.prompt_embeddings)
    keys = jax.block_until_ready(pool.keys)

    # Verify the kernel reproduces `init_emb.view(K, P*E)` exactly.
    ref = jnp.reshape(
        init_emb, (config["K"], config["prompt_len"] * config["embed_size"])
    )
    assert prompt_emb.shape == (
        config["K"],
        config["prompt_len"] * config["embed_size"],
    )
    assert keys.shape == (config["K"], config["embed_size"])
    assert jnp.array_equal(prompt_emb, ref)

    # forward() is a faithful no-op, like the reference.
    assert pool.forward() is None

    print("KERNEL_OK")
</pallas_src>

<mosaic_0001>
module attributes {stable_mosaic.version = 11 : i64} {
  func.func @_copy_rows_kernel(%arg0: i32, %arg1: memref<4x256xf32, #tpu.memory_space<vmem>>, %arg2: memref<4x256xf32, #tpu.memory_space<vmem>>) attributes {dimension_semantics = [#tpu.dimension_semantics<parallel>], iteration_bounds = array<i64: 1>, scalar_prefetch = 0 : i64, scratch_operands = 0 : i64, tpu.core_type = #tpu.core_type<tc>, window_params = [{transform_indices = @transform_0, window_bounds = array<i64: 4, 256>}, {transform_indices = @transform_1, window_bounds = array<i64: 4, 256>}]} {
    %c0 = arith.constant 0 : index
    %c0_0 = arith.constant 0 : index
    %0 = vector.load %arg1[%c0, %c0_0] : memref<4x256xf32, #tpu.memory_space<vmem>>, vector<4x256xf32>
    %c0_1 = arith.constant 0 : index
    %c0_2 = arith.constant 0 : index
    %1 = vector.load %arg2[%c0_1, %c0_2] : memref<4x256xf32, #tpu.memory_space<vmem>>, vector<4x256xf32>
    tpu.vector_store %arg2[%c0_1, %c0_2], %0 {strides = array<i32>} : memref<4x256xf32, #tpu.memory_space<vmem>>, vector<4x256xf32>,
    return
  }
  func.func @transform_0(%arg0: i32) -> (i32, i32) {
    %c0_i32 = arith.constant 0 : i32
    %c0_i32_0 = arith.constant 0 : i32
    return %arg0, %c0_i32 : i32, i32
  }
  func.func @transform_1(%arg0: i32) -> (i32, i32) {
    %c0_i32 = arith.constant 0 : i32
    %c0_i32_0 = arith.constant 0 : i32
    return %arg0, %c0_i32 : i32, i32
  }
}

</mosaic_0001>

<bundles_post_ra>
// kernel: tpu_custom_call.1
= control target key start
LH: loop header
LB: loop body
LE: loop exit
PB: predicated region body
PF: predicated region fallthrough
CT: control target
= control target key end

     0   :  { %6 = vsyncpa [#allocation3], 0  ;;  %s124_s0 = inlined_call_operand.hbm [shape: f32[4,256], index: 0, kind: input, shape index: {}]   ;;  %s125_s1 = inlined_call_operand.hbm [shape: f32[4,256], index: 1, kind: output, shape index: {}]  }
   0x1   :  { %7 = vsyncpa [#allocation4], 0  ;;  %s88_s6 = smov [#allocation2]   ;;  %s40_s10 = scalar_lea.hbm %s124_s0, 128 }
   0x2   :  { %s14_s7 = sshll.u32 %s88_s6, 4  ;;  %p41_p0 = scmp.ne.s32.totalorder %s124_s0, %s40_s10  ;;  %s15_s7 = int_to_ptr.vmem [resolvable:$true] %s14_s7 }
   0x3   :  { %p44_p1 = scmp.lt.u32.totalorder %s40_s10, %s124_s0 }
   0x5   :  { %p46_p2 = pnand %p44_p1, %p41_p0 }
   0x7   :  { %49 = shalt.err (!%p46_p2)
}
   0x8   :  { %s50_s15 = scalar_lea.vmem %s15_s7, 128  ;;  %p55_p4 = scmp.lt.s32.totalorder %s15_s7, %s15_s7 }
   0x9   :  { %p51_p3 = scmp.ne.s32.totalorder %s15_s7, %s50_s15  ;;  %p56_p5 = scmp.lt.s32.totalorder %s50_s15, %s50_s15 }
   0xb   :  { %p57_p6 = por %p56_p5, %p55_p4 }
   0xd   :  { %p58_p7 = pnand %p57_p6, %p51_p3 }
   0xf   :  { %61 = shalt.err (!%p58_p7)
}
  0x10   :  { %17 = dma.hbm_to_vmem [thread:$0]  %s124_s0, 128, %s15_s7, [#allocation3]  }
  0x11   :  { %84 = dma.done.wait [#allocation3], 128  }
  0x12   :  { %85 = vsyncadd [#allocation3], 4294967168  ;;  %s89_s18 = smov [#allocation5]   ;;  %v21_v0 = vld [vmem:[#allocation2] sm:$0xff] }
  0x13   :  { %s29_s19 = sshll.u32 %s89_s18, 4  ;;  %22 = vst [vmem:[#allocation5] sm:$0xff] %v21_v0  ;;  %s30_s19 = int_to_ptr.vmem [resolvable:$true] %s29_s19 }
  0x14   :  { %s62_s20 = scalar_lea.vmem %s30_s19, 128  ;;  %p67_p9 = scmp.lt.s32.totalorder %s30_s19, %s30_s19 }
  0x15   :  { %p63_p8 = scmp.ne.s32.totalorder %s30_s19, %s62_s20  ;;  %p68_p10 = scmp.lt.s32.totalorder %s62_s20, %s62_s20 }
  0x17   :  { %p69_p11 = por %p68_p10, %p67_p9 }
  0x19   :  { %p70_p12 = pnand %p69_p11, %p63_p8 }
  0x1b   :  { %73 = shalt.err (!%p70_p12)
}
  0x1c   :  { %s74_s23 = scalar_lea.hbm %s125_s1, 128 }
  0x1d   :  { %p75_p13 = scmp.ne.s32.totalorder %s125_s1, %s74_s23  ;;  %p78_p0 = scmp.lt.u32.totalorder %s74_s23, %s125_s1 }
  0x1f   :  { %p80_p1 = pnand %p78_p0, %p75_p13 }
  0x21   :  { %83 = shalt.err (!%p80_p1)
}
  0x22   :  { %32 = dma.vmem_to_hbm [thread:$0]  %s30_s19, 128, %s125_s1, [#allocation4]  }
  0x23   :  { %86 = dma.done.wait [#allocation4], 128  }
  0x24   :  { %87 = vsyncadd [#allocation4], 4294967168 }
  0x25   :  { %36 = vsyncpa [#allocation3], 1 }
  0x26   :  { %37 = vsyncpa [#allocation4], 1 }

</bundles_post_ra>
